<compile_context>
chip_gen: v5e
topology: v5e:2x2
jax: 0.10.0
libtpu: 0.0.40
codegen_flags: <defaults>
</compile_context>

<pallas_src>
import functools

import jax
import jax.numpy as jnp
from jax.experimental import pallas as pl
from jax.experimental.pallas import tpu as pltpu

LAYER_SIZES = [(1, 128), (128, 64), (64, 32), (32, 8), (8, 1)]


def _round_up(a, m):
    return ((a + m - 1) // m) * m


def _tpu_generation():
    """Best-effort TPU generation (4/5/6/7); 0 if unknown."""
    try:
        kind = jax.devices()[0].device_kind.lower()
    except Exception:
        return 0
    for gen in (7, 6, 5, 4, 3, 2):
        if str(gen) in kind:
            return gen
    return 0


def _block_diag2(w):
    """[[w, 0], [0, w]]: one MXU pass carries two independent batch halves."""
    z = jnp.zeros_like(w)
    top = jnp.concatenate([w, z], axis=1)
    bot = jnp.concatenate([z, w], axis=1)
    return jnp.concatenate([top, bot], axis=0)


def mlp_kernel(x_ref,
               w1_ref, b1_ref,
               w2_ref, b2_ref,
               w3_ref, b3_ref,
               w4_ref, b4_ref,
               w5_ref, b5_ref,
               o_ref, *, pack):
    """One batch tile, feature-major, `pack` independent batch halves per MXU pass.

    x_ref : (pack, T2)                              lane-dense batch tile
    w1_ref: (128, 1), b1_ref: (128, 1)              layer 1 (VPU broadcast, K=1)
    w2_ref: (pack*64, pack*128), b2_ref: (pack*64, 1)   block-diagonal MXU weights
    w3_ref: (pack*32, pack*64),  b3_ref: (pack*32, 1)
    w4_ref: (pack*8,  pack*32),  b4_ref: (pack*8,  1)
    w5_ref: (pack*8, 1), b5_ref: (1, 1)             layer 5 (VPU mul + sublane reduce)
    o_ref : (pack, T2)                              lane-dense output slab
    """
    el_dtype = w1_ref.dtype      # elementwise/VPU dtype (f32, or bf16 on v6e/v7x)
    mm_dtype = w2_ref.dtype      # MXU operand dtype (bf16 fast path or f32)

    # Layer 1 (1 -> 128): K=1 contraction == broadcast multiply -> VPU, keep MXU free.
    w1 = w1_ref[...]
    b1 = b1_ref[...]
    parts = [
        jnp.maximum(w1 * x_ref[p:p + 1, :].astype(el_dtype) + b1, 0.0)
        for p in range(pack)
    ]
    h = parts[0] if pack == 1 else jnp.concatenate(parts, axis=0)   # (pack*128, T2)

    # Layers 2-4: MXU dots, lane-dense N=T2, f32 accumulation, bias+ReLU on the VPU.
    def dense_relu(w_ref, b_ref, h):
        acc = jnp.dot(w_ref[...], h.astype(mm_dtype),
                      preferred_element_type=jnp.float32)
        return jnp.maximum(acc.astype(el_dtype) + b_ref[...], 0.0)

    h = dense_relu(w2_ref, b2_ref, h)   # (pack*64, T2)
    h = dense_relu(w3_ref, b3_ref, h)   # (pack*32, T2)
    h = dense_relu(w4_ref, b4_ref, h)   # (pack*8,  T2)

    # Layer 5 (8 -> 1): an N=1 matmul would waste the MXU -> VPU mul + sublane reduce
    # per packed batch half (8-term sum accumulated in f32).
    prod = (w5_ref[...] * h).astype(jnp.float32)          # (pack*8, T2)
    b5 = b5_ref[...].astype(jnp.float32)                  # (1, 1)
    for p in range(pack):
        s = jnp.sum(prod[p * 8:(p + 1) * 8, :], axis=0, keepdims=True)   # (1, T2)
        o_ref[p:p + 1, :] = (s + b5).astype(o_ref.dtype)


def multi_layer_network(x, params, *, tile_b=None, pack=None,
                        matmul_dtype=jnp.bfloat16, elementwise_dtype=None,
                        vmem_limit_bytes=None, min_grid_steps=None):
    """x: (B, 1) float32. params: [(W, b)] with W shape (in, out), b shape (out,)."""
    B = x.shape[0]
    (w1, b1), (w2, b2), (w3, b3), (w4, b4), (w5, b5) = params

    gen = _tpu_generation()
    if pack is None:
        # x2 block-diagonal packing fills the 256x256 MXU (v6e/v7x). On v5e's 128x128
        # MXU, K>128 splits back into two passes -> keep pack=1 there.
        pack = 2 if (gen == 0 or gen >= 6) else 1
    if tile_b is None:
        tile_b = 16384 if gen in (5, 6) else 8192
    if vmem_limit_bytes is None:
        vmem_limit_bytes = (64 * 1024 * 1024 if gen in (5, 6) else
                            48 * 1024 * 1024 if gen == 7 else
                            32 * 1024 * 1024)
    if min_grid_steps is None:
        # v7x has two TensorCores; the "parallel" grid axis needs >=2 steps to use both.
        min_grid_steps = 2 if gen in (0, 7) else 1
    if elementwise_dtype is None:
        # bf16 VPU exists on v6e/v7x only; elsewhere keep the elementwise chain in f32.
        elementwise_dtype = (matmul_dtype
                             if (gen >= 6 and matmul_dtype == jnp.bfloat16)
                             else jnp.float32)
    el, mm = elementwise_dtype, matmul_dtype

    # Feature-major (transposed) weights; block-diagonal x`pack` for the MXU layers.
    def tiled_col(v, dtype):
        c = v.reshape(-1, 1).astype(dtype)
        return c if pack == 1 else jnp.concatenate([c] * pack, axis=0)

    def bd(wT):
        return wT if pack == 1 else _block_diag2(wT)

    flat = [
        w1.T.astype(el),             b1.reshape(-1, 1).astype(el),
        bd(w2.T.astype(mm)),         tiled_col(b2, el),
        bd(w3.T.astype(mm)),         tiled_col(b3, el),
        bd(w4.T.astype(mm)),         tiled_col(b4, el),
        tiled_col(w5.reshape(-1), el),
        b5.reshape(1, 1).astype(el),
    ]

    # Batch along lanes: pad to the tile granularity; tile is a multiple of pack*128.
    lane = pack * 128
    lane_b = _round_up(B, lane)
    tile = max(lane, (min(tile_b, lane_b) // lane) * lane)
    if min_grid_steps > 1 and lane_b >= min_grid_steps * lane:
        cap = max(lane, (lane_b // min_grid_steps // lane) * lane)
        tile = min(tile, cap)
    padded_b = _round_up(lane_b, tile)
    t2 = tile // pack
    grid = (padded_b // tile,)

    x_flat = jnp.pad(x.reshape(B).astype(jnp.float32), (0, padded_b - B))
    x_slab = x_flat.reshape(pack, padded_b // pack)   # row p = batch segment p

    const_map = lambda i: (0, 0)                       # weights resident across tiles
    weight_specs = [pl.BlockSpec(a.shape, const_map) for a in flat]

    flops = 2 * padded_b * sum(i * o for i, o in LAYER_SIZES)
    weight_bytes = sum(int(a.size) * a.dtype.itemsize for a in flat)
    bytes_accessed = 4 * padded_b + 4 * padded_b + weight_bytes

    out = pl.pallas_call(
        functools.partial(mlp_kernel, pack=pack),
        out_shape=jax.ShapeDtypeStruct((pack, padded_b // pack), jnp.float32),
        grid=grid,
        in_specs=[pl.BlockSpec((pack, t2), lambda i: (0, i))] + weight_specs,
        out_specs=pl.BlockSpec((pack, t2), lambda i: (0, i)),
        compiler_params=pltpu.CompilerParams(
            dimension_semantics=("parallel",),         # megacore sharding on v7x
            vmem_limit_bytes=vmem_limit_bytes,
        ),
        cost_estimate=pl.CostEstimate(
            flops=flops, transcendentals=0, bytes_accessed=bytes_accessed),
    )(x_slab, *flat)

    # Row-major flatten restores batch order (row p holds batch segment p).
    return out.reshape(padded_b)[:B].reshape(B, 1)


def init_params(key):
    """Deterministic init mimicking PyTorch Linear default (uniform +/- 1/sqrt(fan_in))."""
    params = []
    for (fan_in, fan_out) in LAYER_SIZES:
        key, kw, kb = jax.random.split(key, 3)
        bound = 1.0 / jnp.sqrt(fan_in)
        w = jax.random.uniform(kw, (fan_in, fan_out), jnp.float32, -bound, bound)
        b = jax.random.uniform(kb, (fan_out,), jnp.float32, -bound, bound)
        params.append((w, b))
    return params


def reference(x, params):
    h = x
    for i, (w, b) in enumerate(params):
        h = h @ w + b
        if i < len(params) - 1:
            h = jnp.maximum(h, 0.0)
    return h


if __name__ == "__main__":
    key = jax.random.PRNGKey(0)
    key, kx = jax.random.split(key)
    params = init_params(key)

    # Small-batch check, full-precision path (tight tolerance).
    B = 8
    x = jax.random.normal(kx, (B, 1), dtype=jnp.float32)
    out = jax.block_until_ready(multi_layer_network(
        x, params, matmul_dtype=jnp.float32, elementwise_dtype=jnp.float32))
    ref = reference(x, params)
    assert out.shape == (B, 1)
    assert jnp.allclose(out, ref, atol=1e-4, rtol=1e-4)

    # Multi-tile + padding path (B=300, tile 256) for both packing variants, f32.
    key, kx2 = jax.random.split(key)
    x2 = jax.random.normal(kx2, (300, 1), dtype=jnp.float32)
    ref2 = reference(x2, params)
    for pck in (1, 2):
        out2 = jax.block_until_ready(multi_layer_network(
            x2, params, tile_b=256, pack=pck,
            matmul_dtype=jnp.float32, elementwise_dtype=jnp.float32))
        assert out2.shape == (300, 1)
        assert jnp.allclose(out2, ref2, atol=1e-4, rtol=1e-4), f"pack={pck}"

    # Chip-default fast path (bf16 MXU everywhere; bf16 elementwise on v6e/v7x).
    out3 = jax.block_until_ready(multi_layer_network(x2, params))
    assert jnp.allclose(out3, ref2, atol=1e-1, rtol=1e-1)

    print("KERNEL_OK")
</pallas_src>

<mosaic_0001>
module attributes {stable_mosaic.version = 11 : i64} {
  func.func @mlp_kernel(%arg0: i32, %arg1: memref<2x128xf32, #tpu.memory_space<vmem>>, %arg2: memref<128x1xf32, #tpu.memory_space<vmem>>, %arg3: memref<128x1xf32, #tpu.memory_space<vmem>>, %arg4: memref<128x256xf32, #tpu.memory_space<vmem>>, %arg5: memref<128x1xf32, #tpu.memory_space<vmem>>, %arg6: memref<64x128xf32, #tpu.memory_space<vmem>>, %arg7: memref<64x1xf32, #tpu.memory_space<vmem>>, %arg8: memref<16x64xf32, #tpu.memory_space<vmem>>, %arg9: memref<16x1xf32, #tpu.memory_space<vmem>>, %arg10: memref<16x1xf32, #tpu.memory_space<vmem>>, %arg11: memref<1x1xf32, #tpu.memory_space<vmem>>, %arg12: memref<2x128xf32, #tpu.memory_space<vmem>>) attributes {dimension_semantics = [#tpu.dimension_semantics<parallel>], iteration_bounds = array<i64: 1>, scalar_prefetch = 0 : i64, scratch_operands = 0 : i64, tpu.core_type = #tpu.core_type<tc>, window_params = [{transform_indices = @transform_0, window_bounds = array<i64: 2, 128>}, {pipeline_mode = #tpu.pipeline_mode<synchronous>, transform_indices = @transform_1, window_bounds = array<i64: 128, 1>}, {pipeline_mode = #tpu.pipeline_mode<synchronous>, transform_indices = @transform_2, window_bounds = array<i64: 128, 1>}, {pipeline_mode = #tpu.pipeline_mode<synchronous>, transform_indices = @transform_3, window_bounds = array<i64: 128, 256>}, {pipeline_mode = #tpu.pipeline_mode<synchronous>, transform_indices = @transform_4, window_bounds = array<i64: 128, 1>}, {pipeline_mode = #tpu.pipeline_mode<synchronous>, transform_indices = @transform_5, window_bounds = array<i64: 64, 128>}, {pipeline_mode = #tpu.pipeline_mode<synchronous>, transform_indices = @transform_6, window_bounds = array<i64: 64, 1>}, {pipeline_mode = #tpu.pipeline_mode<synchronous>, transform_indices = @transform_7, window_bounds = array<i64: 16, 64>}, {pipeline_mode = #tpu.pipeline_mode<synchronous>, transform_indices = @transform_8, window_bounds = array<i64: 16, 1>}, {pipeline_mode = #tpu.pipeline_mode<synchronous>, transform_indices = @transform_9, window_bounds = array<i64: 16, 1>}, {pipeline_mode = #tpu.pipeline_mode<synchronous>, transform_indices = @transform_10, window_bounds = array<i64: 1, 1>}, {transform_indices = @transform_11, window_bounds = array<i64: 2, 128>}]} {
    %c0 = arith.constant 0 : index
    %c0_0 = arith.constant 0 : index
    %0 = vector.load %arg2[%c0, %c0_0] : memref<128x1xf32, #tpu.memory_space<vmem>>, vector<128x1xf32>
    %c0_1 = arith.constant 0 : index
    %c0_2 = arith.constant 0 : index
    %1 = vector.load %arg3[%c0_1, %c0_2] : memref<128x1xf32, #tpu.memory_space<vmem>>, vector<128x1xf32>
    %c0_3 = arith.constant 0 : index
    %c0_4 = arith.constant 0 : index
    %2 = vector.load %arg1[%c0_3, %c0_4] : memref<2x128xf32, #tpu.memory_space<vmem>>, vector<1x128xf32>
    %3 = vector.broadcast %0 : vector<128x1xf32> to vector<128x128xf32>
    %4 = vector.broadcast %2 : vector<1x128xf32> to vector<128x128xf32>
    %5 = arith.mulf %3, %4 : vector<128x128xf32>
    %6 = vector.broadcast %1 : vector<128x1xf32> to vector<128x128xf32>
    %7 = arith.addf %5, %6 : vector<128x128xf32>
    %cst = arith.constant 0.000000e+00 : f32
    %8 = vector.broadcast %cst : f32 to vector<128x128xf32>
    %9 = arith.maximumf %7, %8 : vector<128x128xf32>
    %c1 = arith.constant 1 : index
    %c0_5 = arith.constant 0 : index
    %10 = vector.load %arg1[%c1, %c0_5] : memref<2x128xf32, #tpu.memory_space<vmem>>, vector<1x128xf32>
    %11 = vector.broadcast %0 : vector<128x1xf32> to vector<128x128xf32>
    %12 = vector.broadcast %10 : vector<1x128xf32> to vector<128x128xf32>
    %13 = arith.mulf %11, %12 : vector<128x128xf32>
    %14 = vector.broadcast %1 : vector<128x1xf32> to vector<128x128xf32>
    %15 = arith.addf %13, %14 : vector<128x128xf32>
    %cst_6 = arith.constant 0.000000e+00 : f32
    %16 = vector.broadcast %cst_6 : f32 to vector<128x128xf32>
    %17 = arith.maximumf %15, %16 : vector<128x128xf32>
    %18 = tpu.concatenate %9, %17 in 0 : vector<128x128xf32>, vector<128x128xf32> -> vector<256x128xf32>
    %c0_7 = arith.constant 0 : index
    %c0_8 = arith.constant 0 : index
    %19 = vector.load %arg4[%c0_7, %c0_8] : memref<128x256xf32, #tpu.memory_space<vmem>>, vector<128x256xf32>
    %cst_9 = arith.constant dense<0.000000e+00> : vector<128x128xf32>
    %20 = tpu.matmul %19, %18, %cst_9 {dimension_numbers = #tpu.dot_dimension_numbers<[1], [0], [0], [1], [0, 0, 1, 1], [], []>} : vector<128x256xf32>, vector<256x128xf32>, vector<128x128xf32> -> vector<128x128xf32>
    %c0_10 = arith.constant 0 : index
    %c0_11 = arith.constant 0 : index
    %21 = vector.load %arg5[%c0_10, %c0_11] : memref<128x1xf32, #tpu.memory_space<vmem>>, vector<128x1xf32>
    %22 = vector.broadcast %21 : vector<128x1xf32> to vector<128x128xf32>
    %23 = arith.addf %20, %22 : vector<128x128xf32>
    %cst_12 = arith.constant 0.000000e+00 : f32
    %24 = vector.broadcast %cst_12 : f32 to vector<128x128xf32>
    %25 = arith.maximumf %23, %24 : vector<128x128xf32>
    %c0_13 = arith.constant 0 : index
    %c0_14 = arith.constant 0 : index
    %26 = vector.load %arg6[%c0_13, %c0_14] : memref<64x128xf32, #tpu.memory_space<vmem>>, vector<64x128xf32>
    %cst_15 = arith.constant dense<0.000000e+00> : vector<64x128xf32>
    %27 = tpu.matmul %26, %25, %cst_15 {dimension_numbers = #tpu.dot_dimension_numbers<[1], [0], [0], [1], [0, 0, 1, 1], [], []>} : vector<64x128xf32>, vector<128x128xf32>, vector<64x128xf32> -> vector<64x128xf32>
    %c0_16 = arith.constant 0 : index
    %c0_17 = arith.constant 0 : index
    %28 = vector.load %arg7[%c0_16, %c0_17] : memref<64x1xf32, #tpu.memory_space<vmem>>, vector<64x1xf32>
    %29 = vector.broadcast %28 : vector<64x1xf32> to vector<64x128xf32>
    %30 = arith.addf %27, %29 : vector<64x128xf32>
    %cst_18 = arith.constant 0.000000e+00 : f32
    %31 = vector.broadcast %cst_18 : f32 to vector<64x128xf32>
    %32 = arith.maximumf %30, %31 : vector<64x128xf32>
    %c0_19 = arith.constant 0 : index
    %c0_20 = arith.constant 0 : index
    %33 = vector.load %arg8[%c0_19, %c0_20] : memref<16x64xf32, #tpu.memory_space<vmem>>, vector<16x64xf32>
    %cst_21 = arith.constant dense<0.000000e+00> : vector<16x128xf32>
    %34 = tpu.matmul %33, %32, %cst_21 {dimension_numbers = #tpu.dot_dimension_numbers<[1], [0], [0], [1], [0, 0, 1, 1], [], []>} : vector<16x64xf32>, vector<64x128xf32>, vector<16x128xf32> -> vector<16x128xf32>
    %c0_22 = arith.constant 0 : index
    %c0_23 = arith.constant 0 : index
    %35 = vector.load %arg9[%c0_22, %c0_23] : memref<16x1xf32, #tpu.memory_space<vmem>>, vector<16x1xf32>
    %36 = vector.broadcast %35 : vector<16x1xf32> to vector<16x128xf32>
    %37 = arith.addf %34, %36 : vector<16x128xf32>
    %cst_24 = arith.constant 0.000000e+00 : f32
    %38 = vector.broadcast %cst_24 : f32 to vector<16x128xf32>
    %39 = arith.maximumf %37, %38 : vector<16x128xf32>
    %c0_25 = arith.constant 0 : index
    %c0_26 = arith.constant 0 : index
    %40 = vector.load %arg10[%c0_25, %c0_26] : memref<16x1xf32, #tpu.memory_space<vmem>>, vector<16x1xf32>
    %41 = vector.broadcast %40 : vector<16x1xf32> to vector<16x128xf32>
    %42 = arith.mulf %41, %39 : vector<16x128xf32>
    %c0_27 = arith.constant 0 : index
    %c0_28 = arith.constant 0 : index
    %43 = vector.load %arg11[%c0_27, %c0_28] : memref<1x1xf32, #tpu.memory_space<vmem>>, vector<1x1xf32>
    %44 = vector.extract_strided_slice %42 {offsets = [0, 0], sizes = [8, 128], strides = [1, 1]} : vector<16x128xf32> to vector<8x128xf32>
    %cst_29 = arith.constant dense<0.000000e+00> : vector<128xf32>
    %45 = vector.multi_reduction <add>, %44, %cst_29 [0] : vector<8x128xf32> to vector<128xf32>
    %46 = vector.shape_cast %45 : vector<128xf32> to vector<1x128xf32>
    %47 = vector.broadcast %43 : vector<1x1xf32> to vector<1x128xf32>
    %48 = arith.addf %46, %47 : vector<1x128xf32>
    %c0_30 = arith.constant 0 : index
    %c0_31 = arith.constant 0 : index
    %49 = vector.load %arg12[%c0_30, %c0_31] : memref<2x128xf32, #tpu.memory_space<vmem>>, vector<1x128xf32>
    tpu.vector_store %arg12[%c0_30, %c0_31], %48 {strides = array<i32>} : memref<2x128xf32, #tpu.memory_space<vmem>>, vector<1x128xf32>,
    %50 = vector.extract_strided_slice %42 {offsets = [8, 0], sizes = [8, 128], strides = [1, 1]} : vector<16x128xf32> to vector<8x128xf32>
    %cst_32 = arith.constant dense<0.000000e+00> : vector<128xf32>
    %51 = vector.multi_reduction <add>, %50, %cst_32 [0] : vector<8x128xf32> to vector<128xf32>
    %52 = vector.shape_cast %51 : vector<128xf32> to vector<1x128xf32>
    %53 = vector.broadcast %43 : vector<1x1xf32> to vector<1x128xf32>
    %54 = arith.addf %52, %53 : vector<1x128xf32>
    %c1_33 = arith.constant 1 : index
    %c0_34 = arith.constant 0 : index
    %55 = vector.load %arg12[%c1_33, %c0_34] : memref<2x128xf32, #tpu.memory_space<vmem>>, vector<1x128xf32>
    tpu.vector_store %arg12[%c1_33, %c0_34], %54 {strides = array<i32>} : memref<2x128xf32, #tpu.memory_space<vmem>>, vector<1x128xf32>,
    return
  }
  func.func @transform_0(%arg0: i32) -> (i32, i32) {
    %c0_i32 = arith.constant 0 : i32
    %c0_i32_0 = arith.constant 0 : i32
    return %c0_i32, %arg0 : i32, i32
  }
  func.func @transform_1(%arg0: i32) -> (i32, i32) {
    %c0_i32 = arith.constant 0 : i32
    %c0_i32_0 = arith.constant 0 : i32
    %c0_i32_1 = arith.constant 0 : i32
    return %c0_i32, %c0_i32_0 : i32, i32
  }
  func.func @transform_2(%arg0: i32) -> (i32, i32) {
    %c0_i32 = arith.constant 0 : i32
    %c0_i32_0 = arith.constant 0 : i32
    %c0_i32_1 = arith.constant 0 : i32
    return %c0_i32, %c0_i32_0 : i32, i32
  }
  func.func @transform_3(%arg0: i32) -> (i32, i32) {
    %c0_i32 = arith.constant 0 : i32
    %c0_i32_0 = arith.constant 0 : i32
    %c0_i32_1 = arith.constant 0 : i32
    return %c0_i32, %c0_i32_0 : i32, i32
  }
  func.func @transform_4(%arg0: i32) -> (i32, i32) {
    %c0_i32 = arith.constant 0 : i32
    %c0_i32_0 = arith.constant 0 : i32
    %c0_i32_1 = arith.constant 0 : i32
    return %c0_i32, %c0_i32_0 : i32, i32
  }
  func.func @transform_5(%arg0: i32) -> (i32, i32) {
    %c0_i32 = arith.constant 0 : i32
    %c0_i32_0 = arith.constant 0 : i32
    %c0_i32_1 = arith.constant 0 : i32
    return %c0_i32, %c0_i32_0 : i32, i32
  }
  func.func @transform_6(%arg0: i32) -> (i32, i32) {
    %c0_i32 = arith.constant 0 : i32
    %c0_i32_0 = arith.constant 0 : i32
    %c0_i32_1 = arith.constant 0 : i32
    return %c0_i32, %c0_i32_0 : i32, i32
  }
  func.func @transform_7(%arg0: i32) -> (i32, i32) {
    %c0_i32 = arith.constant 0 : i32
    %c0_i32_0 = arith.constant 0 : i32
    %c0_i32_1 = arith.constant 0 : i32
    return %c0_i32, %c0_i32_0 : i32, i32
  }
  func.func @transform_8(%arg0: i32) -> (i32, i32) {
    %c0_i32 = arith.constant 0 : i32
    %c0_i32_0 = arith.constant 0 : i32
    %c0_i32_1 = arith.constant 0 : i32
    return %c0_i32, %c0_i32_0 : i32, i32
  }
  func.func @transform_9(%arg0: i32) -> (i32, i32) {
    %c0_i32 = arith.constant 0 : i32
    %c0_i32_0 = arith.constant 0 : i32
    %c0_i32_1 = arith.constant 0 : i32
    return %c0_i32, %c0_i32_0 : i32, i32
  }
  func.func @transform_10(%arg0: i32) -> (i32, i32) {
    %c0_i32 = arith.constant 0 : i32
    %c0_i32_0 = arith.constant 0 : i32
    %c0_i32_1 = arith.constant 0 : i32
    return %c0_i32, %c0_i32_0 : i32, i32
  }
  func.func @transform_11(%arg0: i32) -> (i32, i32) {
    %c0_i32 = arith.constant 0 : i32
    %c0_i32_0 = arith.constant 0 : i32
    return %c0_i32, %arg0 : i32, i32
  }
}

</mosaic_0001>

<bundles_post_ra>
// kernel: tpu_custom_call.1
= control target key start
LH: loop header
LB: loop body
LE: loop exit
PB: predicated region body
PF: predicated region fallthrough
CT: control target
= control target key end

     0   :  { %s1418_s0 = inlined_call_operand.vmem [shape: f32[2,128], index: 0, kind: input, shape index: {}]   ;;  %s1419_s1 = inlined_call_operand.vmem [shape: f32[128,1], index: 1, kind: input, shape index: {}]   ;;  %s1420_s2 = inlined_call_operand.vmem [shape: f32[128,1], index: 2, kind: input, shape index: {}]   ;;  %s1421_s3 = inlined_call_operand.vmem [shape: f32[128,256], index: 3, kind: input, shape index: {}]   ;;  %s1422_s4 = inlined_call_operand.vmem [shape: f32[128,1], index: 4, kind: input, shape index: {}]   ;;  %s1423_s5 = inlined_call_operand.vmem [shape: f32[64,128], index: 5, kind: input, shape index: {}]   ;;  %s1424_s6 = inlined_call_operand.vmem [shape: f32[64,1], index: 6, kind: input, shape index: {}]   ;;  %s1425_s7 = inlined_call_operand.vmem [shape: f32[16,64], index: 7, kind: input, shape index: {}]   ;;  %s1426_s8 = inlined_call_operand.vmem [shape: f32[16,1], index: 8, kind: input, shape index: {}]   ;;  %s1427_s9 = inlined_call_operand.vmem [shape: f32[16,1], index: 9, kind: input, shape index: {}]   ;;  %s1428_s10 = inlined_call_operand.<no memory space> [shape: f32[1,1], index: 10, kind: input, shape index: {}]   ;;  %s1429_s11 = inlined_call_operand.hbm [shape: f32[2,128], index: 11, kind: output, shape index: {}]  }
   0x1   :  { %v16_v0 = vstv %s1428_s10 }
   0x2   :  { %17 = vst [vmem:[#allocation2] sm:$0x1] %v16_v0 }
   0x3   :  { %v72_v1 = vld [vmem:[%s1420_s2 + $0x78] sm:$0xff]  ;;  %v71_v2 = vld [vmem:[%s1420_s2 + $0x70] sm:$0xff]  ;;  %v878_v4 = vmov 0  }
   0x4   :  { %v56_v3 = vld [vmem:[%s1419_s1 + $0x78] sm:$0xff]  ;;  %849 = vset.pattern.permute.xlu2 %v878_v4  ;;  %848 = vset.pattern.permute.xlu1 %v878_v4 }
   0x5   :  { %847 = vset.pattern.permute.xlu0 %v878_v4  ;;  %248 = vperm.xlu1 %848, %v72_v1  }
   0x6   :  { %243 = vperm.xlu2 %849, %v71_v2   ;;  %151 = vperm.xlu0 %847, %v56_v3  }
   0x7   :  { %18 = vsyncpa [#allocation4], 0  ;;  %v54_v5 = vld [vmem:[%s1419_s1 + $0x68] sm:$0xff]  ;;  %v55_v6 = vld [vmem:[%s1419_s1 + $0x70] sm:$0xff]  ;;  %vm726_vm0 = vcmask 523264   ;;  %s802_s14 = sshll.u32 %s1429_s11, 4  ;;  %s803_s14 = int_to_ptr.hbm [resolvable:$true] %s802_s14 }
   0x8   :  { %v53_v7 = vld [vmem:[%s1419_s1 + $0x60] sm:$0xff]  ;;  %v52_v8 = vld [vmem:[%s1419_s1 + $0x58] sm:$0xff]  ;;  %v70_v9 = vld [vmem:[%s1420_s2 + $0x68] sm:$0xff] }
   0x9   :  { %v69_v10 = vld [vmem:[%s1420_s2 + $0x60] sm:$0xff]  ;;  %v68_v11 = vld [vmem:[%s1420_s2 + $0x58] sm:$0xff]  ;;  %v51_v12 = vld [vmem:[%s1419_s1 + $0x50] sm:$0xff] }
   0xa   :  { %v50_v13 = vld [vmem:[%s1419_s1 + $0x48] sm:$0xff]  ;;  %v49_v14 = vld [vmem:[%s1419_s1 + $0x40] sm:$0xff]  ;;  %v67_v15 = vld [vmem:[%s1420_s2 + $0x50] sm:$0xff] }
   0xb   :  { %v66_v16 = vld [vmem:[%s1420_s2 + $0x48] sm:$0xff]  ;;  %v65_v17 = vld [vmem:[%s1420_s2 + $0x40] sm:$0xff]  ;;  %v48_v18 = vld [vmem:[%s1419_s1 + $0x38] sm:$0xff] }
   0xc   :  { %v47_v19 = vld [vmem:[%s1419_s1 + $0x30] sm:$0xff]  ;;  %v46_v20 = vld [vmem:[%s1419_s1 + $0x28] sm:$0xff]  ;;  %v64_v21 = vld [vmem:[%s1420_s2 + $0x38] sm:$0xff] }
   0xd   :  { %141 = vperm.xlu1 %848, %v54_v5   ;;  %v63_v22 = vld [vmem:[%s1420_s2 + $0x30] sm:$0xff]  ;;  %v62_v23 = vld [vmem:[%s1420_s2 + $0x28] sm:$0xff]  ;;  %v45_v24 = vld [vmem:[%s1419_s1 + $0x20] sm:$0xff] }
   0xe   :  { %146 = vperm.xlu0 %847, %v55_v6   ;;  %136 = vperm.xlu2 %849, %v53_v7   ;;  %v44_v25 = vld [vmem:[%s1419_s1 + $0x18] sm:$0xff]  ;;  %v43_v26 = vld [vmem:[%s1419_s1 + $0x10] sm:$0xff]  ;;  %v61_v27 = vld [vmem:[%s1420_s2 + $0x20] sm:$0xff] }
   0xf   :  { %v60_v28 = vld [vmem:[%s1420_s2 + $0x18] sm:$0xff]  ;;  %v59_v29 = vld [vmem:[%s1420_s2 + $0x10] sm:$0xff]  ;;  %v42_v30 = vld [vmem:[%s1419_s1 + $0x8] sm:$0xff] }
  0x10   :  { %v41_v31 = vld [vmem:[%s1419_s1] sm:$0xff]  ;;  %v58_v33 = vld [vmem:[%s1420_s2 + $0x8] sm:$0xff]  ;;  %v380_v34 = vld [vmem:[%s1422_s4 + $0x78] sm:$0xff] }
  0x11   :  { %v57_v32 = vld [vmem:[%s1420_s2] sm:$0xff]  ;;  %v378_v35 = vld [vmem:[%s1422_s4 + $0x68] sm:$0xff]  ;;  %v379_v36 = vld [vmem:[%s1422_s4 + $0x70] sm:$0xff] }
  0x12   :  { %v377_v37 = vld [vmem:[%s1422_s4 + $0x60] sm:$0xff]  ;;  %v375_v38 = vld [vmem:[%s1422_s4 + $0x50] sm:$0xff]  ;;  %v376_v39 = vld [vmem:[%s1422_s4 + $0x58] sm:$0xff] }
  0x13   :  { %v374_v40 = vld [vmem:[%s1422_s4 + $0x48] sm:$0xff]  ;;  %v372_v42 = vld [vmem:[%s1422_s4 + $0x38] sm:$0xff]  ;;  %v373_v43 = vld [vmem:[%s1422_s4 + $0x40] sm:$0xff] }
  0x14   :  { %v371_v44 = vld [vmem:[%s1422_s4 + $0x30] sm:$0xff]  ;;  %v369_v46 = vld [vmem:[%s1422_s4 + $0x20] sm:$0xff]  ;;  %v370_v47 = vld [vmem:[%s1422_s4 + $0x28] sm:$0xff] }
  0x15   :  { %131 = vperm.xlu1 %848, %v52_v8   ;;  %v368_v48 = vld [vmem:[%s1422_s4 + $0x18] sm:$0xff]  ;;  %v1081_v49 = vld [vmem:[%s1418_s0] ss:$0 sm:$0xff]  ;;  %v1086_v50 = vld [vmem:[%s1418_s0 + $0x1] ss:$0 sm:$0xff] }
  0x16   :  { %238 = vperm.xlu0 %847, %v70_v9   ;;  %233 = vperm.xlu2 %849, %v69_v10   ;;  %v366_v56 = vld [vmem:[%s1422_s4 + $0x8] sm:$0xff]  ;;  %v367_v57 = vld [vmem:[%s1422_s4 + $0x10] sm:$0xff]  ;;  %v365_v58 = vld [vmem:[%s1422_s4] sm:$0xff] }
  0x17   :  { %v621_v3 = vld [vmem:[%s1424_s6 + $0x30] sm:$0xff]  ;;  %v622_v4 = vld [vmem:[%s1424_s6 + $0x38] sm:$0xff]  ;;  %v620_v5 = vld [vmem:[%s1424_s6 + $0x28] sm:$0xff] }
  0x1d   :  { %228 = vperm.xlu1 %848, %v68_v11  }
  0x1e   :  { %126 = vperm.xlu0 %847, %v51_v12   ;;  %121 = vperm.xlu2 %849, %v50_v13  }
  0x25   :  { %116 = vperm.xlu1 %848, %v49_v14  }
  0x26   :  { %223 = vperm.xlu0 %847, %v67_v15   ;;  %218 = vperm.xlu2 %849, %v66_v16  }
  0x2d   :  { %213 = vperm.xlu1 %848, %v65_v17  }
  0x2e   :  { %111 = vperm.xlu0 %847, %v48_v18   ;;  %106 = vperm.xlu2 %849, %v47_v19  }
  0x35   :  { %101 = vperm.xlu1 %848, %v46_v20  }
  0x36   :  { %208 = vperm.xlu0 %847, %v64_v21   ;;  %203 = vperm.xlu2 %849, %v63_v22  }
  0x3d   :  { %198 = vperm.xlu1 %848, %v62_v23   ;;  %v618_v23 = vld [vmem:[%s1424_s6 + $0x18] sm:$0xff] }
  0x3e   :  { %96 = vperm.xlu0 %847, %v45_v24   ;;  %91 = vperm.xlu2 %849, %v44_v25   ;;  %v619_v24 = vld [vmem:[%s1424_s6 + $0x20] sm:$0xff]  ;;  %v617_v25 = vld [vmem:[%s1424_s6 + $0x10] sm:$0xff] }
  0x45   :  { %86 = vperm.xlu1 %848, %v43_v26  }
  0x46   :  { %193 = vperm.xlu0 %847, %v61_v27   ;;  %188 = vperm.xlu2 %849, %v60_v28  }
  0x4d   :  { %183 = vperm.xlu1 %848, %v59_v29  }
  0x4e   :  { %81 = vperm.xlu0 %847, %v42_v30   ;;  %76 = vperm.xlu2 %849, %v41_v31  }
  0x55   :  { %173 = vperm.xlu1 %848, %v57_v32  }
  0x56   :  { %178 = vperm.xlu0 %847, %v58_v33   ;;  %458 = vperm.xlu2 %849, %v380_v34  }
  0x5d   :  { %448 = vperm.xlu1 %848, %v378_v35  }
  0x5e   :  { %453 = vperm.xlu0 %847, %v379_v36   ;;  %443 = vperm.xlu2 %849, %v377_v37   ;;  %v615_v37 = vld [vmem:[%s1424_s6] sm:$0xff] }
  0x60   :  { %v244_v41 = vpop.permute.xlu2 %243 }
  0x65   :  { %433 = vperm.xlu1 %848, %v375_v38   ;;  %v616_v38 = vld [vmem:[%s1424_s6 + $0x8] sm:$0xff] }
  0x66   :  { %438 = vperm.xlu0 %847, %v376_v39   ;;  %428 = vperm.xlu2 %849, %v374_v40   ;;  %v714_v39 = vld [vmem:[%s1426_s8] sm:$0xff] }
  0x68   :  { %v137_v45 = vpop.permute.xlu2 %136 }
  0x69   :  { %v167_v11 = vmul.f32 %v1081_v49, %v137_v45  ;;  %v297_v12 = vmul.f32 %v1086_v50, %v137_v45 }
  0x6d   :  { %418 = vperm.xlu1 %848, %v372_v42  }
  0x6e   :  { %423 = vperm.xlu0 %847, %v373_v43   ;;  %413 = vperm.xlu2 %849, %v371_v44  }
  0x70   :  { %v234_v55 = vpop.permute.xlu2 %233 }
  0x71   :  { %v263_v19 = vadd.f32 %v234_v55, %v167_v11  ;;  %v1126_v20 = vadd.f32 %v297_v12, %v234_v55  ;;  %v758_v55 = vld [vmem:[%s1427_s9] sm:$0xff] }
  0x73   :  { %v279_v29 = vmax.f32 %v263_v19, 0.0  ;;  %v329_v30 = vmax.f32 %v1126_v20, 0.0  ;;  %v340_v20 = vld [vmem:[%s1421_s3 + $0x38] sm:$0xff] }
  0x75   :  { %403 = vperm.xlu1 %848, %v369_v46  }
  0x76   :  { %408 = vperm.xlu0 %847, %v370_v47   ;;  %398 = vperm.xlu2 %849, %v368_v48  }
  0x77   :  { %v249_v51 = vpop.permute.xlu1 %248 }
  0x78   :  { %v152_v52 = vpop.permute.xlu0 %151  ;;  %v122_v8 = vpop.permute.xlu2 %121 }
  0x79   :  { %v170_v53 = vmul.f32 %v1081_v49, %v152_v52  ;;  %v300_v54 = vmul.f32 %v1086_v50, %v152_v52  ;;  %v164_v40 = vmul.f32 %v1081_v49, %v122_v8 }
  0x7b   :  { %v266_v59 = vadd.f32 %v249_v51, %v170_v53  ;;  %v1099_v60 = vadd.f32 %v300_v54, %v249_v51 }
  0x7d   :  { %388 = vperm.xlu1 %848, %v366_v56   ;;  %v282_v61 = vmax.f32 %v266_v59, 0.0  ;;  %v332_v62 = vmax.f32 %v1099_v60, 0.0  ;;  %v715_v56 = vld [vmem:[%s1426_s8 + $0x8] sm:$0xff]  ;;  %v337_v60 = vld [vmem:[%s1421_s3 + $0x20] sm:$0xff] }
  0x7e   :  { %393 = vperm.xlu0 %847, %v367_v57   ;;  %383 = vperm.xlu2 %849, %v365_v58   ;;  %v759_v57 = vld [vmem:[%s1427_s9 + $0x8] sm:$0xff] }
  0x7f   :  { %461 = vmatpush.msra.mxu0 %v282_v61  ;;  %813 = vmatpush.msra.mxu3 %v282_v61  ;;  %v142_v63 = vpop.permute.xlu1 %141 }
  0x80   :  { %526 = vmatpush.msra.mxu1 %v332_v62  ;;  %v147_v0 = vpop.permute.xlu0 %146  ;;  %v168_v13 = vmul.f32 %v1081_v49, %v142_v63  ;;  %v298_v14 = vmul.f32 %v1086_v50, %v142_v63  ;;  %v219_v26 = vpop.permute.xlu2 %218 }
  0x81   :  { %v169_v1 = vmul.f32 %v1081_v49, %v147_v0  ;;  %v299_v2 = vmul.f32 %v1086_v50, %v147_v0  ;;  %v260_v51 = vadd.f32 %v219_v26, %v164_v40 }
  0x83   :  { %v265_v6 = vadd.f32 %v244_v41, %v169_v1  ;;  %v1115_v7 = vadd.f32 %v299_v2, %v244_v41  ;;  %v294_v41 = vmul.f32 %v1086_v50, %v122_v8  ;;  %v276_v61 = vmax.f32 %v260_v51, 0.0  ;;  %v772_v8 = vld [vmem:[#allocation2] sm:$0x1] }
  0x85   :  { %655 = vperm.xlu1 %848, %v621_v3   ;;  %v281_v9 = vmax.f32 %v265_v6, 0.0  ;;  %v331_v10 = vmax.f32 %v1115_v7, 0.0  ;;  %v1165_v52 = vadd.f32 %v294_v41, %v219_v26  ;;  %v338_v7 = vld [vmem:[%s1421_s3 + $0x28] sm:$0xff] }
  0x86   :  { %660 = vperm.xlu0 %847, %v622_v4   ;;  %650 = vperm.xlu2 %849, %v620_v5  }
  0x87   :  { %462 = vmatpush.msra.mxu0 %v281_v9  ;;  %814 = vmatpush.msra.mxu3 %v281_v9  ;;  %v132_v15 = vpop.permute.xlu1 %131  ;;  %v326_v63 = vmax.f32 %v1165_v52, 0.0  ;;  %v344_v52 = vld [vmem:[%s1421_s3 + $0x58] sm:$0xff] }
  0x88   :  { %527 = vmatpush.msra.mxu1 %v331_v10  ;;  %v239_v16 = vpop.permute.xlu0 %238  ;;  %v166_v27 = vmul.f32 %v1081_v49, %v132_v15  ;;  %v296_v28 = vmul.f32 %v1086_v50, %v132_v15  ;;  %v107_v45 = vpop.permute.xlu2 %106 }
  0x89   :  { %v264_v17 = vadd.f32 %v239_v16, %v168_v13  ;;  %v1124_v18 = vadd.f32 %v298_v14, %v239_v16  ;;  %v161_v9 = vmul.f32 %v1081_v49, %v107_v45  ;;  %v291_v14 = vmul.f32 %v1086_v50, %v107_v45 }
  0x8b   :  { %v280_v21 = vmax.f32 %v264_v17, 0.0  ;;  %v330_v22 = vmax.f32 %v1124_v18, 0.0  ;;  %v361_v18 = vld [vmem:[%s1421_s3 + $0xe0] sm:$0xff] }
  0x8d   :  { %463 = vmatpush.msra.mxu0 %v280_v21  ;;  %815 = vmatpush.msra.mxu3 %v280_v21 }
  0x8e   :  { %528 = vmatpush.msra.mxu1 %v330_v22  ;;  %640 = vperm.xlu1 %848, %v618_v23  }
  0x8f   :  { %645 = vperm.xlu0 %847, %v619_v24   ;;  %635 = vperm.xlu2 %849, %v617_v25   ;;  %v229_v31 = vpop.permute.xlu1 %228 }
  0x90   :  { %464 = vmatpush.msra.mxu0 %v279_v29  ;;  %816 = vmatpush.msra.mxu3 %v279_v29  ;;  %v262_v32 = vadd.f32 %v229_v31, %v166_v27  ;;  %v1143_v33 = vadd.f32 %v296_v28, %v229_v31  ;;  %v127_v34 = vpop.permute.xlu0 %126  ;;  %v204_v4 = vpop.permute.xlu2 %203 }
  0x91   :  { %529 = vmatpush.msra.mxu1 %v329_v30  ;;  %v165_v42 = vmul.f32 %v1081_v49, %v127_v34  ;;  %v295_v43 = vmul.f32 %v1086_v50, %v127_v34  ;;  %v257_v16 = vadd.f32 %v204_v4, %v161_v9  ;;  %v1195_v21 = vadd.f32 %v291_v14, %v204_v4 }
  0x92   :  { %v278_v35 = vmax.f32 %v262_v32, 0.0  ;;  %v328_v36 = vmax.f32 %v1143_v33, 0.0  ;;  %v342_v33 = vld [vmem:[%s1421_s3 + $0x48] sm:$0xff] }
  0x93   :  { %v273_v26 = vmax.f32 %v257_v16, 0.0  ;;  %v323_v29 = vmax.f32 %v1195_v21, 0.0  ;;  %v348_v21 = vld [vmem:[%s1421_s3 + $0x78] sm:$0xff] }
  0x94   :  { %465 = vmatpush.msra.mxu0 %v278_v35  ;;  %817 = vmatpush.msra.mxu3 %v278_v35 }
  0x95   :  { %530 = vmatpush.msra.mxu1 %v328_v36 }
  0x96   :  { %625 = vperm.xlu1 %848, %v615_v37  }
  0x97   :  { %630 = vperm.xlu0 %847, %v616_v38   ;;  %718 = vperm.xlu2 %849, %v714_v39   ;;  %v117_v44 = vpop.permute.xlu1 %116 }
  0x98   :  { %v224_v46 = vpop.permute.xlu0 %223  ;;  %v163_v58 = vmul.f32 %v1081_v49, %v117_v44  ;;  %v293_v59 = vmul.f32 %v1086_v50, %v117_v44  ;;  %v92_v25 = vpop.permute.xlu2 %91 }
  0x99   :  { %v261_v47 = vadd.f32 %v224_v46, %v165_v42  ;;  %v1163_v48 = vadd.f32 %v295_v43, %v224_v46  ;;  %v158_v40 = vmul.f32 %v1081_v49, %v92_v25  ;;  %v288_v44 = vmul.f32 %v1086_v50, %v92_v25 }
  0x9b   :  { %v277_v53 = vmax.f32 %v261_v47, 0.0  ;;  %v327_v54 = vmax.f32 %v1163_v48, 0.0  ;;  %v356_v48 = vld [vmem:[%s1421_s3 + $0xb8] sm:$0xff] }
  0x9d   :  { %466 = vmatpush.msra.mxu0 %v277_v53  ;;  %818 = vmatpush.msra.mxu3 %v277_v53 }
  0x9e   :  { %531 = vmatpush.msra.mxu1 %v327_v54  ;;  %762 = vperm.xlu1 %848, %v758_v55  }
  0x9f   :  { %723 = vperm.xlu0 %847, %v715_v56   ;;  %767 = vperm.xlu2 %849, %v759_v57   ;;  %v214_v0 = vpop.permute.xlu1 %213 }
  0xa0   :  { %467 = vmatpush.msra.mxu0 %v276_v61  ;;  %819 = vmatpush.msra.mxu3 %v276_v61  ;;  %v259_v1 = vadd.f32 %v214_v0, %v163_v58  ;;  %v1182_v2 = vadd.f32 %v293_v59, %v214_v0  ;;  %v112_v3 = vpop.permute.xlu0 %111  ;;  %v189_v39 = vpop.permute.xlu2 %188 }
  0xa1   :  { %532 = vmatpush.msra.mxu1 %v326_v63  ;;  %v162_v11 = vmul.f32 %v1081_v49, %v112_v3  ;;  %v292_v12 = vmul.f32 %v1086_v50, %v112_v3  ;;  %v254_v46 = vadd.f32 %v189_v39, %v158_v40  ;;  %v1216_v53 = vadd.f32 %v288_v44, %v189_v39  ;;  %v357_v39 = vld [vmem:[%s1421_s3 + $0xc0] sm:$0xff]  ;;  %v336_v40 = vld [vmem:[%s1421_s3 + $0x18] sm:$0xff] }
  0xa2   :  { %v275_v5 = vmax.f32 %v259_v1, 0.0  ;;  %v325_v6 = vmax.f32 %v1182_v2, 0.0  ;;  %v346_v2 = vld [vmem:[%s1421_s3 + $0x68] sm:$0xff]  ;;  %v353_v44 = vld [vmem:[%s1421_s3 + $0xa0] sm:$0xff] }
  0xa3   :  { %v270_v57 = vmax.f32 %v254_v46, 0.0  ;;  %v320_v61 = vmax.f32 %v1216_v53, 0.0 }
  0xa4   :  { %468 = vmatpush.msra.mxu0 %v275_v5  ;;  %820 = vmatpush.msra.mxu3 %v275_v5 }
  0xa5   :  { %533 = vmatpush.msra.mxu1 %v325_v6 }
  0xa7   :  { %781 = vperm.xlu0 %847, %v772_v8   ;;  %v102_v13 = vpop.permute.xlu1 %101 }
  0xa8   :  { %v209_v15 = vpop.permute.xlu0 %208  ;;  %v160_v27 = vmul.f32 %v1081_v49, %v102_v13  ;;  %v290_v28 = vmul.f32 %v1086_v50, %v102_v13  ;;  %v77_v9 = vpop.permute.xlu2 %76 }
  0xa9   :  { %v258_v17 = vadd.f32 %v209_v15, %v162_v11  ;;  %v1193_v19 = vadd.f32 %v292_v12, %v209_v15  ;;  %v155_v11 = vmul.f32 %v1081_v49, %v77_v9  ;;  %v285_v15 = vmul.f32 %v1086_v50, %v77_v9 }
  0xab   :  { %v274_v23 = vmax.f32 %v258_v17, 0.0  ;;  %v324_v24 = vmax.f32 %v1193_v19, 0.0  ;;  %v360_v19 = vld [vmem:[%s1421_s3 + $0xd8] sm:$0xff] }
  0xad   :  { %469 = vmatpush.msra.mxu0 %v274_v23  ;;  %821 = vmatpush.msra.mxu3 %v274_v23 }
  0xae   :  { %534 = vmatpush.msra.mxu1 %v324_v24 }
  0xaf   :  { %470 = vmatpush.msra.mxu0 %v273_v26  ;;  %822 = vmatpush.msra.mxu3 %v273_v26  ;;  %v199_v31 = vpop.permute.xlu1 %198 }
  0xb0   :  { %535 = vmatpush.msra.mxu1 %v323_v29  ;;  %v256_v32 = vadd.f32 %v199_v31, %v160_v27  ;;  %v1205_v34 = vadd.f32 %v290_v28, %v199_v31  ;;  %v97_v35 = vpop.permute.xlu0 %96 }
  0xb1   :  { %v159_v41 = vmul.f32 %v1081_v49, %v97_v35  ;;  %v289_v42 = vmul.f32 %v1086_v50, %v97_v35  ;;  %v334_v35 = vld [vmem:[%s1421_s3 + $0x8] sm:$0xff] }
  0xb2   :  { %v272_v37 = vmax.f32 %v256_v32, 0.0  ;;  %v322_v38 = vmax.f32 %v1205_v34, 0.0  ;;  %v333_v32 = vld [vmem:[%s1421_s3] sm:$0xff]  ;;  %v350_v34 = vld [vmem:[%s1421_s3 + $0x88] sm:$0xff] }
  0xb4   :  { %471 = vmatpush.msra.mxu0 %v272_v37  ;;  %823 = vmatpush.msra.mxu3 %v272_v37  ;;  %v335_v37 = vld [vmem:[%s1421_s3 + $0x10] sm:$0xff] }
  0xb5   :  { %536 = vmatpush.msra.mxu1 %v322_v38 }
  0xb7   :  { %v87_v43 = vpop.permute.xlu1 %86 }
  0xb8   :  { %v194_v45 = vpop.permute.xlu0 %193  ;;  %v157_v58 = vmul.f32 %v1081_v49, %v87_v43  ;;  %v287_v59 = vmul.f32 %v1086_v50, %v87_v43  ;;  %v459_v43 = vpop.permute.xlu2 %458 }
  0xb9   :  { %v255_v47 = vadd.f32 %v194_v45, %v159_v41  ;;  %v1214_v51 = vadd.f32 %v289_v42, %v194_v45  ;;  %v364_v41 = vld [vmem:[%s1421_s3 + $0xf8] sm:$0xff]  ;;  %v354_v45 = vld [vmem:[%s1421_s3 + $0xa8] sm:$0xff] }
  0xba   :  { %v352_v42 = vld [vmem:[%s1421_s3 + $0x98] sm:$0xff] }
  0xbb   :  { %v271_v55 = vmax.f32 %v255_v47, 0.0  ;;  %v321_v56 = vmax.f32 %v1214_v51, 0.0 }
  0xbd   :  { %472 = vmatpush.msra.mxu0 %v271_v55  ;;  %824 = vmatpush.msra.mxu3 %v271_v55 }
  0xbe   :  { %537 = vmatpush.msra.mxu1 %v321_v56 }
  0xbf   :  { %473 = vmatpush.msra.mxu0 %v270_v57  ;;  %825 = vmatpush.msra.mxu3 %v270_v57  ;;  %v184_v0 = vpop.permute.xlu1 %183 }
  0xc0   :  { %538 = vmatpush.msra.mxu1 %v320_v61  ;;  %v253_v1 = vadd.f32 %v184_v0, %v157_v58  ;;  %v1226_v3 = vadd.f32 %v287_v59, %v184_v0  ;;  %v82_v4 = vpop.permute.xlu0 %81  ;;  %v444_v46 = vpop.permute.xlu2 %443 }
  0xc1   :  { %v156_v12 = vmul.f32 %v1081_v49, %v82_v4  ;;  %v286_v13 = vmul.f32 %v1086_v50, %v82_v4  ;;  %v355_v50 = vld [vmem:[%s1421_s3 + $0xb0] sm:$0xff] }
  0xc2   :  { %v269_v5 = vmax.f32 %v253_v1, 0.0  ;;  %v319_v8 = vmax.f32 %v1226_v3, 0.0 }
  0xc4   :  { %474 = vmatpush.msra.mxu0 %v269_v5  ;;  %826 = vmatpush.msra.mxu3 %v269_v5 }
  0xc5   :  { %539 = vmatpush.msra.mxu1 %v319_v8 }
  0xc7   :  { %v174_v14 = vpop.permute.xlu1 %173 }
  0xc8   :  { %v179_v16 = vpop.permute.xlu0 %178  ;;  %v251_v17 = vadd.f32 %v174_v14, %v155_v11  ;;  %v301_v26 = vadd.f32 %v285_v15, %v174_v14  ;;  %v1355_v51 = vpop.permute.xlu2 %428 }
  0xc9   :  { %v252_v23 = vadd.f32 %v179_v16, %v156_v12  ;;  %v302_v25 = vadd.f32 %v286_v13, %v179_v16 }
  0xca   :  { %v267_v31 = vmax.f32 %v251_v17, 0.0  ;;  %v317_v49 = vmax.f32 %v301_v26, 0.0 }
  0xcb   :  { %v268_v27 = vmax.f32 %v252_v23, 0.0  ;;  %v318_v28 = vmax.f32 %v302_v25, 0.0 }
  0xcd   :  { %475 = vmatpush.msra.mxu0 %v268_v27  ;;  %827 = vmatpush.msra.mxu3 %v268_v27 }
  0xce   :  { %540 = vmatpush.msra.mxu1 %v318_v28 }
  0xcf   :  { %476 = vmatpush.msra.mxu0 %v267_v31  ;;  %828 = vmatpush.msra.mxu3 %v267_v31  ;;  %v449_v47 = vpop.permute.xlu1 %448 }
  0xd0   :  { %541 = vmatpush.msra.mxu1 %v317_v49  ;;  %477 = vmatmul.f32.vlgmr.msra.gmra.mxu0 %v333_v32  ;;  %v454_v53 = vpop.permute.xlu0 %453 }
  0xd1   :  { %510 = vmatmul.f32.vlgmr.msra.gmra.mxu3 %v355_v50  ;;  %542 = vmatmul.f32.vlgmr.msra.gmra.mxu1 %v334_v35 }
  0xd2   :  { %829 = vmatpush.msrb.mxu3 %v332_v62  ;;  %v359_v62 = vld [vmem:[%s1421_s3 + $0xd0] sm:$0xff] }
  0xd4   :  { %830 = vmatpush.msrb.mxu3 %v331_v10  ;;  %v339_v10 = vld [vmem:[%s1421_s3 + $0x30] sm:$0xff] }
  0xd6   :  { %831 = vmatpush.msrb.mxu3 %v330_v22  ;;  %v341_v22 = vld [vmem:[%s1421_s3 + $0x40] sm:$0xff] }
  0xd7   :  { %v434_v55 = vpop.permute.xlu1 %433 }
  0xd8   :  { %832 = vmatpush.msrb.mxu3 %v329_v30  ;;  %480 = vmatmul.f32.gmra.mxu0 %v335_v37  ;;  %v363_v30 = vld [vmem:[%s1421_s3 + $0xf0] sm:$0xff]  ;;  %v439_v57 = vpop.permute.xlu0 %438 }
  0xd9   :  { %513 = vmatmul.f32.gmra.mxu3 %v357_v39  ;;  %545 = vmatmul.f32.gmra.mxu1 %v336_v40 }
  0xda   :  { %833 = vmatpush.msrb.mxu3 %v328_v36  ;;  %v343_v36 = vld [vmem:[%s1421_s3 + $0x50] sm:$0xff] }
  0xdc   :  { %834 = vmatpush.msrb.mxu3 %v327_v54  ;;  %v345_v54 = vld [vmem:[%s1421_s3 + $0x60] sm:$0xff] }
  0xde   :  { %835 = vmatpush.msrb.mxu3 %v326_v63  ;;  %v358_v63 = vld [vmem:[%s1421_s3 + $0xc8] sm:$0xff] }
  0xdf   :  { %v1359_v58 = vpop.permute.xlu1 %418 }
  0xe0   :  { %836 = vmatpush.msrb.mxu3 %v325_v6  ;;  %483 = vmatmul.f32.gmra.mxu0 %v337_v60  ;;  %v347_v6 = vld [vmem:[%s1421_s3 + $0x70] sm:$0xff] }
  0xe1   :  { %516 = vmatmul.f32.gmra.mxu3 %v359_v62  ;;  %548 = vmatmul.f32.gmra.mxu1 %v338_v7 }
  0xe2   :  { %837 = vmatpush.msrb.mxu3 %v324_v24  ;;  %v349_v24 = vld [vmem:[%s1421_s3 + $0x80] sm:$0xff] }
  0xe4   :  { %838 = vmatpush.msrb.mxu3 %v323_v29  ;;  %v362_v29 = vld [vmem:[%s1421_s3 + $0xe8] sm:$0xff] }
  0xe6   :  { %839 = vmatpush.msrb.mxu3 %v322_v38  ;;  %v351_v38 = vld [vmem:[%s1421_s3 + $0x90] sm:$0xff] }
  0xe7   :  { %v1363_v0 = vpop.permute.xlu1 %403 }
  0xe8   :  { %840 = vmatpush.msrb.mxu3 %v321_v56  ;;  %486 = vmatmul.f32.gmra.mxu0 %v339_v10  ;;  %v1357_v56 = vpop.permute.xlu2 %413 }
  0xe9   :  { %519 = vmatmul.f32.gmra.mxu3 %v361_v18  ;;  %551 = vmatmul.f32.gmra.mxu1 %v340_v20 }
  0xea   :  { %841 = vmatpush.msrb.mxu3 %v320_v61  ;;  %v1361_v61 = vpop.permute.xlu0 %423 }
  0xec   :  { %842 = vmatpush.msrb.mxu3 %v319_v8 }
  0xee   :  { %843 = vmatpush.msrb.mxu3 %v318_v28 }
  0xef   :  { %v389_v12 = vpop.permute.xlu1 %388 }
  0xf0   :  { %844 = vmatpush.msrb.mxu3 %v317_v49  ;;  %489 = vmatmul.f32.gmra.mxu0 %v341_v22  ;;  %v399_v59 = vpop.permute.xlu2 %398 }
  0xf1   :  { %522 = vmatmul.f32.gmra.mxu3 %v363_v30  ;;  %554 = vmatmul.f32.gmra.mxu1 %v342_v33 }
  0xf2   :  { %v1367_v9 = vpop.permute.xlu0 %408 }
  0xf8   :  { %492 = vmatmul.f32.gmra.mxu0 %v343_v36  ;;  %v384_v1 = vpop.permute.xlu2 %383 }
  0xf9   :  { %575 = vmatmul.f32.vlgmr.msrb.gmra.mxu3 %v356_v48  ;;  %557 = vmatmul.f32.gmra.mxu1 %v344_v52 }
  0xfa   :  { %v394_v23 = vpop.permute.xlu0 %393 }
 0x100   :  { %495 = vmatmul.f32.gmra.mxu0 %v345_v54 }
 0x101   :  { %578 = vmatmul.f32.gmra.mxu3 %v358_v63  ;;  %560 = vmatmul.f32.gmra.mxu1 %v346_v2 }
 0x108   :  { %498 = vmatmul.f32.gmra.mxu0 %v347_v6 }
 0x109   :  { %581 = vmatmul.f32.gmra.mxu3 %v360_v19  ;;  %563 = vmatmul.f32.gmra.mxu1 %v348_v21 }
 0x110   :  { %501 = vmatmul.f32.gmra.mxu0 %v349_v24 }
 0x111   :  { %584 = vmatmul.f32.gmra.mxu3 %v362_v29  ;;  %566 = vmatmul.f32.gmra.mxu1 %v350_v34 }
 0x118   :  { %504 = vmatmul.f32.gmra.mxu0 %v351_v38 }
 0x119   :  { %587 = vmatmul.f32.gmra.mxu3 %v364_v41  ;;  %569 = vmatmul.f32.gmra.mxu1 %v352_v42 }
 0x120   :  { %507 = vmatmul.f32.gmra.mxu0 %v353_v44 }
 0x121   :  { %572 = vmatmul.f32.gmra.mxu1 %v354_v45 }
 0x14d   :  { %v478_v3 = vpop.f32.mrf.mxu0 }
 0x14e   :  { %v479_v4 = vadd.f32 %v478_v3, %v384_v1  ;;  %v543_v5 = vpop.f32.mrf.mxu1 }
 0x150   :  { %v1365_v8 = vadd.f32 %v543_v5, %v479_v4 }
 0x154   :  { %v511_v11 = vpop.f32.mrf.mxu3 }
 0x155   :  { %v481_v13 = vpop.f32.mrf.mxu0  ;;  %v512_v45 = vadd.f32 %v511_v11, %v439_v57 }
 0x156   :  { %v482_v14 = vadd.f32 %v481_v13, %v389_v12  ;;  %v546_v15 = vpop.f32.mrf.mxu1 }
 0x158   :  { %v1369_v16 = vadd.f32 %v546_v15, %v482_v14 }
 0x15c   :  { %v514_v17 = vpop.f32.mrf.mxu3 }
 0x15d   :  { %v484_v25 = vpop.f32.mrf.mxu0  ;;  %v515_v41 = vadd.f32 %v514_v17, %v444_v46 }
 0x15e   :  { %v485_v26 = vadd.f32 %v484_v25, %v394_v23  ;;  %v549_v27 = vpop.f32.mrf.mxu1 }
 0x160   :  { %v1371_v28 = vadd.f32 %v549_v27, %v485_v26 }
 0x164   :  { %v517_v31 = vpop.f32.mrf.mxu3 }
 0x165   :  { %v487_v32 = vpop.f32.mrf.mxu0  ;;  %v518_v24 = vadd.f32 %v517_v31, %v449_v47 }
 0x166   :  { %v488_v49 = vadd.f32 %v487_v32, %v399_v59  ;;  %v552_v50 = vpop.f32.mrf.mxu1 }
 0x168   :  { %v1373_v35 = vadd.f32 %v552_v50, %v488_v49  ;;  %v593_v50 = vmax.f32 %v1371_v28, 0.0  ;;  %v609_v28 = vld [vmem:[%s1423_s5 + $0x10] sm:$0xff] }
 0x16c   :  { %v520_v37 = vpop.f32.mrf.mxu3 }
 0x16d   :  { %v490_v39 = vpop.f32.mrf.mxu0  ;;  %v521_v6 = vadd.f32 %v520_v37, %v454_v53  ;;  %v591_v37 = vmax.f32 %v1365_v8, 0.0  ;;  %v610_v8 = vld [vmem:[%s1423_s5 + $0x18] sm:$0xff] }
 0x16e   :  { %v555_v40 = vpop.f32.mrf.mxu1  ;;  %v491_v25 = vadd.f32 %v490_v39, %v1363_v0  ;;  %v592_v0 = vmax.f32 %v1369_v16, 0.0  ;;  %v607_v39 = vld [vmem:[%s1423_s5] sm:$0xff] }
 0x16f   :  { %v611_v16 = vld [vmem:[%s1423_s5 + $0x20] sm:$0xff] }
 0x174   :  { %v523_v60 = vpop.f32.mrf.mxu3 }
 0x175   :  { %v493_v62 = vpop.f32.mrf.mxu0  ;;  %v524_v19 = vadd.f32 %v523_v60, %v459_v43  ;;  %v613_v60 = vld [vmem:[%s1423_s5 + $0x30] sm:$0xff] }
 0x176   :  { %v558_v7 = vpop.f32.mrf.mxu1  ;;  %v494_v17 = vadd.f32 %v493_v62, %v1367_v9  ;;  %v594_v9 = vmax.f32 %v1373_v35, 0.0  ;;  %v608_v35 = vld [vmem:[%s1423_s5 + $0x8] sm:$0xff]  ;;  %v614_v62 = vld [vmem:[%s1423_s5 + $0x38] sm:$0xff] }
 0x178   :  { %v559_v27 = vadd.f32 %v558_v7, %v494_v17 }
 0x17c   :  { %v576_v10 = vpop.f32.mrf.mxu3 }
 0x17d   :  { %v496_v18 = vpop.f32.mrf.mxu0  ;;  %v577_v5 = vadd.f32 %v576_v10, %v512_v45 }
 0x17e   :  { %v561_v20 = vpop.f32.mrf.mxu1  ;;  %v497_v57 = vadd.f32 %v496_v18, %v1357_v56  ;;  %v596_v56 = vmax.f32 %v559_v27, 0.0 }
 0x17f   :  { %v602_v14 = vmax.f32 %v577_v5, 0.0 }
 0x184   :  { %v579_v22 = vpop.f32.mrf.mxu3 }
 0x185   :  { %v499_v30 = vpop.f32.mrf.mxu0  ;;  %v580_v59 = vadd.f32 %v579_v22, %v515_v41 }
 0x186   :  { %v564_v33 = vpop.f32.mrf.mxu1  ;;  %v500_v46 = vadd.f32 %v499_v30, %v1359_v58  ;;  %v556_v58 = vadd.f32 %v555_v40, %v491_v25  ;;  %v612_v40 = vld [vmem:[%s1423_s5 + $0x28] sm:$0xff] }
 0x187   :  { %v603_v43 = vmax.f32 %v580_v59, 0.0 }
 0x188   :  { %v565_v23 = vadd.f32 %v564_v33, %v500_v46  ;;  %v595_v49 = vmax.f32 %v556_v58, 0.0  ;;  %v661_v33 = vpop.permute.xlu0 %660 }
 0x18a   :  { %v598_v31 = vmax.f32 %v565_v23, 0.0 }
 0x18c   :  { %v582_v36 = vpop.f32.mrf.mxu3 }
 0x18d   :  { %v502_v48 = vpop.f32.mrf.mxu0  ;;  %v583_v42 = vadd.f32 %v582_v36, %v518_v24  ;;  %v656_v36 = vpop.permute.xlu1 %655 }
 0x18e   :  { %v567_v52 = vpop.f32.mrf.mxu1  ;;  %v503_v47 = vadd.f32 %v502_v48, %v1361_v61  ;;  %v562_v61 = vadd.f32 %v561_v20, %v497_v57 }
 0x18f   :  { %v604_v12 = vmax.f32 %v583_v42, 0.0 }
 0x190   :  { %v597_v32 = vmax.f32 %v562_v61, 0.0 }
 0x194   :  { %v585_v54 = vpop.f32.mrf.mxu3 }
 0x195   :  { %v505_v63 = vpop.f32.mrf.mxu0  ;;  %v586_v29 = vadd.f32 %v585_v54, %v521_v6  ;;  %v646_v54 = vpop.permute.xlu0 %645 }
 0x196   :  { %v570_v2 = vpop.f32.mrf.mxu1  ;;  %v506_v13 = vadd.f32 %v505_v63, %v1355_v51 }
 0x197   :  { %v605_v1 = vmax.f32 %v586_v29, 0.0 }
 0x198   :  { %v571_v15 = vadd.f32 %v570_v2, %v506_v13 }
 0x19a   :  { %v600_v51 = vmax.f32 %v571_v15, 0.0 }
 0x19c   :  { %v588_v21 = vpop.f32.mrf.mxu3 }
 0x19d   :  { %v589_v34 = vadd.f32 %v588_v21, %v524_v19  ;;  %v508_v38 = vpop.f32.mrf.mxu0  ;;  %v641_v19 = vpop.permute.xlu1 %640 }
 0x19e   :  { %v509_v3 = vadd.f32 %v508_v38, %v434_v55  ;;  %v573_v4 = vpop.f32.mrf.mxu1  ;;  %v568_v55 = vadd.f32 %v567_v52, %v503_v47  ;;  %v651_v52 = vpop.permute.xlu2 %650  ;;  %v712_v47 = vld [vmem:[%s1425_s7] sm:$0xff] }
 0x19f   :  { %v606_v44 = vmax.f32 %v589_v34, 0.0  ;;  %v631_v59 = vpop.permute.xlu0 %630 }
 0x1a0   :  { %v574_v53 = vadd.f32 %v573_v4, %v509_v3  ;;  %v599_v26 = vmax.f32 %v568_v55, 0.0 }
 0x1a1   :  { %663 = vmatpush.msra.mxu2 %v606_v44 }
 0x1a2   :  { %v601_v11 = vmax.f32 %v574_v53, 0.0  ;;  %v713_v53 = vld [vmem:[%s1425_s7 + $0x8] sm:$0xff]  ;;  %s879_s7 = smov [#allocation3]  }
 0x1a3   :  { %664 = vmatpush.msra.mxu2 %v605_v1  ;;  %s800_s9 = sshll.u32 %s879_s7, 4  ;;  %s801_s9 = int_to_ptr.vmem [resolvable:$true] %s800_s9 }
 0x1a5   :  { %665 = vmatpush.msra.mxu2 %v604_v12  ;;  %v626_v4 = vpop.permute.xlu1 %625 }
 0x1a6   :  { %v636_v42 = vpop.permute.xlu2 %635 }
 0x1a7   :  { %666 = vmatpush.msra.mxu2 %v603_v43 }
 0x1a9   :  { %667 = vmatpush.msra.mxu2 %v602_v14 }
 0x1ab   :  { %668 = vmatpush.msra.mxu2 %v601_v11  ;;  %v724_v11 = vpop.permute.xlu0 %723 }
 0x1ad   :  { %669 = vmatpush.msra.mxu2 %v600_v51  ;;  %v763_v55 = vpop.permute.xlu1 %762 }
 0x1ae   :  { %v719_v14 = vpop.permute.xlu2 %718 }
 0x1af   :  { %670 = vmatpush.msra.mxu2 %v599_v26 }
 0x1b1   :  { %671 = vmatpush.msra.mxu2 %v598_v31 }
 0x1b3   :  { %672 = vmatpush.msra.mxu2 %v597_v32 }
 0x1b5   :  { %673 = vmatpush.msra.mxu2 %v596_v56  ;;  %v782_v56 = vpop.permute.xlu0 %781 }
 0x1b6   :  { %v768_v31 = vpop.permute.xlu2 %767 }
 0x1b7   :  { %674 = vmatpush.msra.mxu2 %v595_v49 }
 0x1b9   :  { %675 = vmatpush.msra.mxu2 %v594_v9 }
 0x1bb   :  { %676 = vmatpush.msra.mxu2 %v593_v50  ;;  %v784_v50 = vperm.slane %v782_v56, 0 }
 0x1bd   :  { %677 = vmatpush.msra.mxu2 %v592_v0 }
 0x1bf   :  { %678 = vmatpush.msra.mxu2 %v591_v37 }
 0x1c0   :  { %679 = vmatmul.f32.vlgmr.msra.gmra.mxu2 %v607_v39 }
 0x1c8   :  { %682 = vmatmul.f32.gmra.mxu2 %v608_v35 }
 0x1d0   :  { %685 = vmatmul.f32.gmra.mxu2 %v609_v28 }
 0x1d8   :  { %688 = vmatmul.f32.gmra.mxu2 %v610_v8 }
 0x1e0   :  { %691 = vmatmul.f32.gmra.mxu2 %v611_v16 }
 0x1e8   :  { %694 = vmatmul.f32.gmra.mxu2 %v612_v40 }
 0x1f0   :  { %697 = vmatmul.f32.gmra.mxu2 %v613_v60 }
 0x1f8   :  { %700 = vmatmul.f32.gmra.mxu2 %v614_v62 }
 0x243   :  { %v680_v7 = vpop.f32.mrf.mxu2 }
 0x244   :  { %v681_v5 = vadd.f32 %v680_v7, %v626_v4 }
 0x246   :  { %v704_v43 = vmax.f32 %v681_v5, 0.0 }
 0x24b   :  { %v683_v10 = vpop.f32.mrf.mxu2 }
 0x24c   :  { %v684_v1 = vadd.f32 %v683_v10, %v631_v59 }
 0x24e   :  { %v705_v13 = vmax.f32 %v684_v1, 0.0 }
 0x253   :  { %v686_v18 = vpop.f32.mrf.mxu2 }
 0x254   :  { %v687_v44 = vadd.f32 %v686_v18, %v636_v42 }
 0x256   :  { %v706_v12 = vmax.f32 %v687_v44, 0.0 }
 0x25b   :  { %v689_v20 = vpop.f32.mrf.mxu2 }
 0x25c   :  { %v690_v38 = vadd.f32 %v689_v20, %v641_v19 }
 0x25e   :  { %v707_v3 = vmax.f32 %v690_v38, 0.0 }
 0x263   :  { %v692_v22 = vpop.f32.mrf.mxu2 }
 0x264   :  { %v693_v29 = vadd.f32 %v692_v22, %v646_v54 }
 0x266   :  { %v708_v45 = vmax.f32 %v693_v29, 0.0 }
 0x26b   :  { %v695_v30 = vpop.f32.mrf.mxu2 }
 0x26c   :  { %v696_v21 = vadd.f32 %v695_v30, %v651_v52 }
 0x26e   :  { %v709_v41 = vmax.f32 %v696_v21, 0.0 }
 0x273   :  { %v698_v48 = vpop.f32.mrf.mxu2 }
 0x274   :  { %v699_v2 = vadd.f32 %v698_v48, %v656_v36 }
 0x276   :  { %v710_v34 = vmax.f32 %v699_v2, 0.0 }
 0x27b   :  { %v701_v63 = vpop.f32.mrf.mxu2 }
 0x27c   :  { %v702_v6 = vadd.f32 %v701_v63, %v661_v33 }
 0x27e   :  { %v711_v24 = vmax.f32 %v702_v6, 0.0 }
 0x280   :  { %741 = vmatpush.msrb.mxu2 %v711_v24 }
 0x282   :  { %742 = vmatpush.msrb.mxu2 %v710_v34 }
 0x284   :  { %743 = vmatpush.msrb.mxu2 %v709_v41 }
 0x286   :  { %744 = vmatpush.msrb.mxu2 %v708_v45 }
 0x288   :  { %745 = vmatpush.msrb.mxu2 %v707_v3 }
 0x28a   :  { %746 = vmatpush.msrb.mxu2 %v706_v12 }
 0x28c   :  { %747 = vmatpush.msrb.mxu2 %v705_v13 }
 0x28e   :  { %748 = vmatpush.msrb.mxu2 %v704_v43 }
 0x28f   :  { %811 = vmatmul.msk.f32.vlgmr.msrb.gmra.mxu2 %vm726_vm0, %v712_v47 }
 0x297   :  { %812 = vmatmul.msk.f32.gmra.mxu2 %vm726_vm0, %v713_v53 }
 0x312   :  { %v750_v46 = vpop.f32.mrf.mxu2 }
 0x313   :  { %v751_v15 = vadd.f32 %v750_v46, %v719_v14 }
 0x315   :  { %v756_v57 = vmax.f32 %v751_v15, 0.0 }
 0x317   :  { %v770_v17 = vmul.f32 %v763_v55, %v756_v57 }
 0x319   :  { %v773_v23 = vrot.slane %v770_v17, 4 }
 0x31a   :  { %v753_v51 = vpop.f32.mrf.mxu2 }
 0x31b   :  { %v774_v25 = vadd.f32 %v773_v23, %v770_v17  ;;  %v754_v61 = vadd.f32 %v753_v51, %v724_v11 }
 0x31d   :  { %v775_v26 = vrot.slane %v774_v25, 2  ;;  %v757_v27 = vmax.f32 %v754_v61, 0.0 }
 0x31f   :  { %v776_v58 = vadd.f32 %v775_v26, %v774_v25  ;;  %v771_v32 = vmul.f32 %v768_v31, %v757_v27 }
 0x321   :  { %v777_v49 = vrot.slane %v776_v58, 1  ;;  %v787_v9 = vrot.slane %v771_v32, 4 }
 0x323   :  { %v788_v0 = vadd.f32 %v787_v9, %v771_v32  ;;  %v778_v37 = vadd.f32 %v777_v49, %v776_v58 }
 0x325   :  { %v789_v39 = vrot.slane %v788_v0, 2  ;;  %v785_v35 = vadd.f32 %v784_v50, %v778_v37 }
 0x327   :  { %v790_v28 = vadd.f32 %v789_v39, %v788_v0  ;;  %786 = vst [vmem:[#allocation3] sm:$0x1] %v785_v35 }
 0x329   :  { %v791_v8 = vrot.slane %v790_v28, 1 }
 0x32b   :  { %v792_v16 = vadd.f32 %v791_v8, %v790_v28 }
 0x32d   :  { %v793_v40 = vadd.f32 %v792_v16, %v784_v50 }
 0x32f   :  { %794 = vst [vmem:[#allocation3 + $0x1] sm:$0x1] %v793_v40 }
 0x330   :  { %805 = dma.vmem_to_hbm [thread:$0]  %s801_s9, 32, %s803_s14, [#allocation4]  }
 0x331   :  { %876 = dma.done.wait [#allocation4], 32  }
 0x332   :  { %877 = vsyncadd [#allocation4], 4294967264 }
 0x333   :  { %810 = vsyncpa [#allocation4], 1 }

</bundles_post_ra>
